<compile_context>
chip_gen: v6e
topology: v6e:2x2x1
jax: 0.10.0
libtpu: 0.0.40
codegen_flags: <defaults>
</compile_context>

<pallas_src>
import math

import jax
import jax.numpy as jnp
from jax.experimental import pallas as pl
from jax.experimental.pallas import tpu as pltpu


def _round_up(a, m):
    return ((a + m - 1) // m) * m


def _cdiv(a, b):
    return (a + b - 1) // b


def aftnn_kernel(x_ref, w_ref, o_ref, acc_ref):
    """One (batch-tile i, feature-chunk k) grid step.

    x_ref:   (TBR, TK)  folded input rows, input dtype
    w_ref:   (TK, G)    beta fold-matrix chunk, same dtype as x
    o_ref:   (TBR, G)   f32 output block (written on the last K step only)
    acc_ref: (TBR, G)   f32 accumulator scratch (resident across the K axis)
    """
    k = pl.program_id(1)

    @pl.when(k == 0)
    def _():
        acc_ref[...] = jnp.zeros_like(acc_ref)

    # MXU matmul with f32 accumulation; no eager f32 upcast of the x tile.
    acc_ref[...] += jnp.dot(x_ref[...], w_ref[...],
                            preferred_element_type=jnp.float32)

    @pl.when(k == pl.num_programs(1) - 1)
    def _():
        o_ref[...] = jnp.exp(acc_ref[...])            # EUP exp on the f32 sums


def aftnn_forward(x, beta, pre_k):
    """x: (B, D_in); beta: (D_in,); pre_k: (1,)  ->  (B, 2) float32."""
    B, D_in = x.shape
    itemsize = jnp.dtype(x.dtype).itemsize

    # ---- lane fold: (B, D_in) -> (R, F) with F = g*D_in a multiple of 128 ----
    g = 128 // math.gcd(D_in, 128)
    # Pad batch only as far as the fold reshape + an 8-folded-row floor require.
    Bp = max(_round_up(B, g), 8 * g)
    if Bp != B:
        x = jnp.pad(x, ((0, Bp - B), (0, 0)))         # pad rows give exp(0)=1, sliced off
    R = Bp // g                                        # folded rows, >= 8
    F = g * D_in                                       # folded row width, multiple of 128
    xf = x.reshape(R, F)                               # free: row-major contiguous relabel

    # Fold matrix: W[a*D_in + d, s] = beta[d] * (a == s);  (xf @ W)[r, s] is the
    # weighted sum for original row r*g + s.
    beta_f32 = beta.reshape(-1).astype(jnp.float32)
    w = (jnp.eye(g, dtype=jnp.float32)[:, None, :]
         * beta_f32[None, :, None]).reshape(F, g)
    w = w.astype(x.dtype)        # bf16 inputs -> bf16 MXU operands; accumulate f32
    # TODO(synk): if D_in is large with gcd(D_in, 128) small, W grows as g^2*D_in and
    #             is re-streamed once per batch tile; cap g in that regime.

    # ---- byte-based tile sizing (per-step x bytes, not a fixed row cap) ----
    target_x_bytes = 4 * 1024 * 1024                   # per x buffer per grid step
    min_rows = 256
    f_units = F // 128
    tk_units = 1                                       # TK = largest mult-of-128 divisor
    for d in range(1, f_units + 1):                    # of F that still allows min_rows
        if f_units % d == 0 and (d * 128) * itemsize * min_rows <= target_x_bytes:
            tk_units = d
    TK = tk_units * 128
    TBR = max(8, (target_x_bytes // (TK * itemsize)) // 8 * 8)
    TBR = min(TBR, (R // 8) * 8)                       # block rows never exceed the array
    n_i = _cdiv(R, TBR)                                # partial tail block reads junk rows
    n_k = F // TK                                      # TK divides F exactly (no K OOB)

    out = pl.pallas_call(
        aftnn_kernel,
        out_shape=jax.ShapeDtypeStruct((n_i * TBR, g), jnp.float32),
        grid=(n_i, n_k),
        in_specs=[
            pl.BlockSpec((TBR, TK), lambda i, k: (i, k)),   # x: batch+K tiled, pipelined
            pl.BlockSpec((TK, g), lambda i, k: (k, 0)),     # W: K tiled, VMEM resident
        ],
        out_specs=pl.BlockSpec((TBR, g), lambda i, k: (i, 0)),
        scratch_shapes=[pltpu.VMEM((TBR, g), jnp.float32)],
        compiler_params=pltpu.CompilerParams(
            dimension_semantics=("parallel", "arbitrary"),
            vmem_limit_bytes=40 * 1024 * 1024,
        ),
    )(xf, w)

    # (n_i*TBR, g) -> flat; entry r*g + s is original row r*g + s; keep the first B.
    exp_col = out.reshape(-1)[:B].reshape(B, 1)
    prek_col = jnp.broadcast_to(pre_k.reshape(1, 1).astype(jnp.float32), (B, 1))
    return jnp.concatenate([exp_col, prek_col], axis=1)


def aftnn_reference(x, beta, pre_k):
    expbetax = jnp.exp(jnp.sum(beta * x.astype(jnp.float32), axis=-1)).reshape(-1, 1)
    prek = jnp.broadcast_to(pre_k.reshape(1, 1), (x.shape[0], 1))
    return jnp.concatenate([expbetax, prek], axis=1)


if __name__ == "__main__":
    key = jax.random.PRNGKey(0)
    kx, kb = jax.random.split(key)

    batch = 2
    D_in = 16

    # Deterministic init mirroring nn.Parameter(torch.randn(D_in)) and pre_k = 1.0;
    # beta scaled down so exp() stays well-conditioned.
    beta = 0.1 * jax.random.normal(kb, (D_in,), dtype=jnp.float32)
    pre_k = jnp.array([1.0], dtype=jnp.float32)
    x = jax.random.normal(kx, (batch, D_in), dtype=jnp.float32)

    out = jax.block_until_ready(aftnn_forward(x, beta, pre_k))
    ref = aftnn_reference(x, beta, pre_k)

    assert out.shape == (batch, 2), out.shape
    # Tolerance covers the case where f32 MXU matmuls run as multi-pass bf16 on some
    # generations; with native f32 passes the error is ~1e-7.
    assert jnp.allclose(out, ref, rtol=1e-2, atol=1e-2), (out, ref)

    print("KERNEL_OK")
</pallas_src>

<mosaic_0001>
module attributes {stable_mosaic.version = 11 : i64} {
  func.func @aftnn_kernel(%arg0: i32, %arg1: i32, %arg2: memref<8x128xf32, #tpu.memory_space<vmem>>, %arg3: memref<128x8xf32, #tpu.memory_space<vmem>>, %arg4: memref<8x8xf32, #tpu.memory_space<vmem>>, %arg5: memref<8x8xf32, #tpu.memory_space<vmem>>) attributes {dimension_semantics = [#tpu.dimension_semantics<parallel>, #tpu.dimension_semantics<arbitrary>], iteration_bounds = array<i64: 1, 1>, scalar_prefetch = 0 : i64, scratch_operands = 1 : i64, tpu.core_type = #tpu.core_type<tc>, window_params = [{transform_indices = @transform_0, window_bounds = array<i64: 8, 128>}, {transform_indices = @transform_1, window_bounds = array<i64: 128, 8>}, {transform_indices = @transform_2, window_bounds = array<i64: 8, 8>}]} {
    %c0_i32 = arith.constant 0 : i32
    %0 = arith.cmpi eq, %arg1, %c0_i32 : i32
    %1 = arith.extui %0 : i1 to i32
    %c0_i32_0 = arith.constant 0 : i32
    %2 = arith.cmpi ne, %1, %c0_i32_0 : i32
    scf.if %2 {
      %cst_10 = arith.constant 0.000000e+00 : f32
      %12 = vector.broadcast %cst_10 : f32 to vector<8x8xf32>
      %c0_11 = arith.constant 0 : index
      %c0_12 = arith.constant 0 : index
      %13 = vector.load %arg5[%c0_11, %c0_12] : memref<8x8xf32, #tpu.memory_space<vmem>>, vector<8x8xf32>
      tpu.vector_store %arg5[%c0_11, %c0_12], %12 {strides = array<i32>} : memref<8x8xf32, #tpu.memory_space<vmem>>, vector<8x8xf32>,
    } else {
    }
    %c0 = arith.constant 0 : index
    %c0_1 = arith.constant 0 : index
    %3 = vector.load %arg5[%c0, %c0_1] : memref<8x8xf32, #tpu.memory_space<vmem>>, vector<8x8xf32>
    %c0_2 = arith.constant 0 : index
    %c0_3 = arith.constant 0 : index
    %4 = vector.load %arg2[%c0_2, %c0_3] : memref<8x128xf32, #tpu.memory_space<vmem>>, vector<8x128xf32>
    %c0_4 = arith.constant 0 : index
    %c0_5 = arith.constant 0 : index
    %5 = vector.load %arg3[%c0_4, %c0_5] : memref<128x8xf32, #tpu.memory_space<vmem>>, vector<128x8xf32>
    %cst = arith.constant dense<0.000000e+00> : vector<8x8xf32>
    %6 = tpu.matmul %4, %5, %cst {dimension_numbers = #tpu.dot_dimension_numbers<[1], [0], [0], [1], [0, 0, 1, 1], [], []>} : vector<8x128xf32>, vector<128x8xf32>, vector<8x8xf32> -> vector<8x8xf32>
    %7 = arith.addf %3, %6 : vector<8x8xf32>
    %c0_6 = arith.constant 0 : index
    %c0_7 = arith.constant 0 : index
    %8 = vector.load %arg5[%c0_6, %c0_7] : memref<8x8xf32, #tpu.memory_space<vmem>>, vector<8x8xf32>
    tpu.vector_store %arg5[%c0_6, %c0_7], %7 {strides = array<i32>} : memref<8x8xf32, #tpu.memory_space<vmem>>, vector<8x8xf32>,
    %c0_i32_8 = arith.constant 0 : i32
    %9 = arith.cmpi eq, %arg1, %c0_i32_8 : i32
    %10 = arith.extui %9 : i1 to i32
    %c0_i32_9 = arith.constant 0 : i32
    %11 = arith.cmpi ne, %10, %c0_i32_9 : i32
    scf.if %11 {
      %c0_10 = arith.constant 0 : index
      %c0_11 = arith.constant 0 : index
      %12 = vector.load %arg5[%c0_10, %c0_11] : memref<8x8xf32, #tpu.memory_space<vmem>>, vector<8x8xf32>
      %13 = math.exp %12 : vector<8x8xf32>
      %c0_12 = arith.constant 0 : index
      %c0_13 = arith.constant 0 : index
      %14 = vector.load %arg4[%c0_12, %c0_13] : memref<8x8xf32, #tpu.memory_space<vmem>>, vector<8x8xf32>
      tpu.vector_store %arg4[%c0_12, %c0_13], %13 {strides = array<i32>} : memref<8x8xf32, #tpu.memory_space<vmem>>, vector<8x8xf32>,
    } else {
    }
    return
  }
  func.func @transform_0(%arg0: i32, %arg1: i32) -> (i32, i32) {
    %c0_i32 = arith.constant 0 : i32
    return %arg0, %arg1 : i32, i32
  }
  func.func @transform_1(%arg0: i32, %arg1: i32) -> (i32, i32) {
    %c0_i32 = arith.constant 0 : i32
    %c0_i32_0 = arith.constant 0 : i32
    return %arg1, %c0_i32 : i32, i32
  }
  func.func @transform_2(%arg0: i32, %arg1: i32) -> (i32, i32) {
    %c0_i32 = arith.constant 0 : i32
    %c0_i32_0 = arith.constant 0 : i32
    return %arg0, %c0_i32 : i32, i32
  }
}

</mosaic_0001>

<bundles_post_ra>
// kernel: tpu_custom_call.1
= control target key start
LH: loop header
LB: loop body
LE: loop exit
PB: predicated region body
PF: predicated region fallthrough
CT: control target
= control target key end

     0   :  { %vm16_vm0 = vcmask 64512   ;;  %v209_v1 = vmov 0.0   ;;  %vm210_vm1 = vmmov 0   ;;  %s284_s0 = inlined_call_operand.vmem [shape: f32[8,128], index: 0, kind: input, shape index: {}]   ;;  %s285_s1 = inlined_call_operand.vmem [shape: f32[128,8], index: 1, kind: input, shape index: {}]   ;;  %s286_s2 = inlined_call_operand.hbm [shape: f32[8,8], index: 2, kind: output, shape index: {}]  }
   0x1   :  { %v35_v0 = vld [vmem:[%s285_s1 + $0x78] sm:$0xff]  ;;  %147 = vmatprep.subr.mxu0 %v209_v1  ;;  %v34_v2 = vld [vmem:[%s285_s1 + $0x70] sm:$0xff]  ;;  %179 = vmatprep.mubr.msk.f32.mxu0 %vm210_vm1, %v209_v1  ;;  %17 = vst.msk [vmem:[#allocation2] sm:$0xff] %vm16_vm0, %v209_v1  ;;  %v33_v3 = vld [vmem:[%s285_s1 + $0x68] sm:$0xff] }
   0x2   :  { %148 = vmatpush3.msra.mxu0 %v35_v0  ;;  %v32_v4 = vld [vmem:[%s285_s1 + $0x60] sm:$0xff] }
   0x3   :  { %149 = vmatprep.subr.mxu0 %v209_v1 }
   0x4   :  { %150 = vmatpush3.msra.mxu0 %v34_v2 }
   0x5   :  { %151 = vmatprep.subr.mxu0 %v209_v1 }
   0x6   :  { %7 = vsyncpa [#allocation4], 0  ;;  %152 = vmatpush3.msra.mxu0 %v33_v3  ;;  %v31_v5 = vld [vmem:[%s285_s1 + $0x58] sm:$0xff]  ;;  %v30_v6 = vld [vmem:[%s285_s1 + $0x50] sm:$0xff]  ;;  %s211_s15 = smov [#allocation3]  }
   0x7   :  { %153 = vmatprep.subr.mxu0 %v209_v1  ;;  %v29_v7 = vld [vmem:[%s285_s1 + $0x48] sm:$0xff]  ;;  %v28_v8 = vld [vmem:[%s285_s1 + $0x40] sm:$0xff]  ;;  %v27_v9 = vld [vmem:[%s285_s1 + $0x38] sm:$0xff]  ;;  %s122_s16 = sshll.u32 %s211_s15, 4  ;;  %s123_s16 = int_to_ptr.vmem [resolvable:$true] %s122_s16 }
   0x8   :  { %154 = vmatpush3.msra.mxu0 %v32_v4  ;;  %v26_v10 = vld [vmem:[%s285_s1 + $0x30] sm:$0xff]  ;;  %v25_v11 = vld [vmem:[%s285_s1 + $0x28] sm:$0xff]  ;;  %v24_v12 = vld [vmem:[%s285_s1 + $0x20] sm:$0xff]  ;;  %p192_p1 = scmp.lt.s32.totalorder %s123_s16, %s123_s16 }
   0x9   :  { %155 = vmatprep.subr.mxu0 %v209_v1  ;;  %v23_v13 = vld [vmem:[%s285_s1 + $0x18] sm:$0xff]  ;;  %v22_v14 = vld [vmem:[%s285_s1 + $0x10] sm:$0xff]  ;;  %v21_v15 = vld [vmem:[%s285_s1 + $0x8] sm:$0xff] }
   0xa   :  { %156 = vmatpush3.msra.mxu0 %v31_v5  ;;  %v20_v16 = vld [vmem:[%s285_s1] sm:$0xff]  ;;  %s187_s1 = scalar_lea.vmem %s123_s16, 128 }
   0xb   :  { %157 = vmatprep.subr.mxu0 %v209_v1  ;;  %v19_v17 = vld [vmem:[%s284_s0] sm:$0xff]  ;;  %p188_p0 = scmp.ne.s32.totalorder %s123_s16, %s187_s1  ;;  %p193_p2 = scmp.lt.s32.totalorder %s187_s1, %s187_s1 }
   0xc   :  { %158 = vmatpush3.msra.mxu0 %v30_v6  ;;  %v18_v18 = vld [vmem:[#allocation2] sm:$0xff] }
   0xd   :  { %159 = vmatprep.subr.mxu0 %v209_v1  ;;  %p194_p3 = por %p193_p2, %p192_p1 }
   0xe   :  { %160 = vmatpush3.msra.mxu0 %v29_v7 }
   0xf   :  { %161 = vmatprep.subr.mxu0 %v209_v1  ;;  %p195_p4 = pnand %p194_p3, %p188_p0 }
  0x10   :  { %162 = vmatpush3.msra.mxu0 %v28_v8 }
  0x11   :  { %163 = vmatprep.subr.mxu0 %v209_v1 }
  0x12   :  { %164 = vmatpush3.msra.mxu0 %v27_v9 }
  0x13   :  { %165 = vmatprep.subr.mxu0 %v209_v1 }
  0x14   :  { %166 = vmatpush3.msra.mxu0 %v26_v10 }
  0x15   :  { %167 = vmatprep.subr.mxu0 %v209_v1 }
  0x16   :  { %168 = vmatpush3.msra.mxu0 %v25_v11 }
  0x17   :  { %169 = vmatprep.subr.mxu0 %v209_v1 }
  0x18   :  { %170 = vmatpush3.msra.mxu0 %v24_v12 }
  0x19   :  { %171 = vmatprep.subr.mxu0 %v209_v1 }
  0x1a   :  { %172 = vmatpush3.msra.mxu0 %v23_v13 }
  0x1b   :  { %173 = vmatprep.subr.mxu0 %v209_v1 }
  0x1c   :  { %174 = vmatpush3.msra.mxu0 %v22_v14 }
  0x1d   :  { %175 = vmatprep.subr.mxu0 %v209_v1 }
  0x1e   :  { %176 = vmatpush3.msra.mxu0 %v21_v15 }
  0x1f   :  { %177 = vmatprep.subr.mxu0 %v209_v1 }
  0x20   :  { %178 = vmatpush3.msra.mxu0 %v20_v16 }
  0x21   :  { %180 = vmatmul.mubr.f32.vlgmr.msra.gmra.mxu0 %v19_v17 }
  0xe1   :  { %v102_v19 = vpop.f32.mrf.mxu0 }
  0xe2   :  { %v106_v20 = vadd.f32 %v102_v19, %v18_v18 }
  0xe3   :  { %v181_v21 = vpop.f32.mrf.mxu0 }
  0xe4   :  { %108 = vst.msk [vmem:[#allocation2] sm:$0xff] %vm16_vm0, %v106_v20 }
  0xeb   :  { %v112_v22 = vld [vmem:[#allocation2] sm:$0xff] }
  0xec   :  { %v113_v23 = vmul.f32 1.442695, %v112_v22 }
  0xee   :  { %185 = vpow2.f32 %v113_v23 }
  0xfb   :  { %v186_v24 = vpop.eup %185 }
  0xfc   :  { %115 = vst.msk [vmem:[#allocation3] sm:$0xff] %vm16_vm0, %v186_v24 }
  0xfd   :  { %198 = shalt.err (!%p195_p4)
}
  0xfe   :  { %125 = dma.vmem_to_hbm [thread:$0]  %s123_s16, 128, %s286_s2, [#allocation4]  }
  0xff   :  { %207 = dma.done.wait [#allocation4], 128  }
 0x100   :  { %208 = vsyncadd [#allocation4], 4294967168 }
 0x101   :  { %129 = vsyncpa [#allocation4], 1 }

</bundles_post_ra>
